<compile_context>
chip_gen: v7x
topology: tpu7x:2x2x1
jax: 0.10.0
libtpu: 0.0.40
codegen_flags: <defaults>
</compile_context>

<pallas_src>
import functools

import jax
import jax.numpy as jnp
from jax.experimental import pallas as pl
from jax.experimental.pallas import tpu as pltpu


def _make_kernel(pad, c_in, c_out, l_out, bn):
    def kernel(x_ref, s_ref, o_ref):
        # x_ref: (bn, c_in, l_in)   s_ref: (l_in, l_out)   o_ref: (bn, c_out, l_out)
        s = s_ref[...]                                   # resident selection matrix
        for b in range(bn):                              # static unroll, bn <= 8
            sub = jnp.dot(x_ref[b], s, preferred_element_type=jnp.float32)  # (c_in, l_out)
            if pad > 0:
                z = jnp.zeros((pad, l_out), jnp.float32)
                sub = jnp.concatenate([z, sub, z], axis=0)                   # (c_out, l_out)
            o_ref[b] = sub.astype(o_ref.dtype)
    return kernel


def _pick_batch_block(n, max_bn=8):
    """Largest divisor of n that is <= max_bn and leaves >= 2 grid steps (megacore)."""
    best = 1
    for bn in range(1, min(n, max_bn) + 1):
        if n % bn != 0:
            continue
        if n >= 2 and n // bn < 2:
            continue
        best = bn
    return best


@functools.partial(jax.jit, static_argnums=(1,))
def lambda_layer(x, planes):
    """x: (N, C, H, W). Returns (N, C + 2*(planes//4), H//2, W//2)."""
    n, c_in, h, w = x.shape
    assert h % 2 == 0 and w % 2 == 0
    pad = planes // 4
    c_out = c_in + 2 * pad
    h_out, w_out = h // 2, w // 2
    l_in, l_out = h * w, h_out * w_out
    bn = _pick_batch_block(n)

    # Combined row+column stride-2 selection matrix: S[2i*w + 2j, i*w_out + j] = 1.
    # 0/1 values are exact in f32/bf16, so the matmul is an exact gather.
    rows = (2 * jnp.arange(h_out)[:, None] * w + 2 * jnp.arange(w_out)[None, :]).reshape(-1)
    s = jnp.zeros((l_in, l_out), jnp.float32).at[rows, jnp.arange(l_out)].set(1.0)
    s = s.astype(x.dtype)

    # Free reshape (contiguous merge of trailing dims): lane-dense input blocks.
    x2 = x.reshape(n, c_in, l_in)

    out_flat = pl.pallas_call(
        _make_kernel(pad, c_in, c_out, l_out, bn),
        out_shape=jax.ShapeDtypeStruct((n, c_out, l_out), x.dtype),
        grid_spec=pltpu.PrefetchScalarGridSpec(
            num_scalar_prefetch=0,
            grid=(n // bn,),
            in_specs=[
                pl.BlockSpec((bn, c_in, l_in), lambda i: (i, 0, 0)),
                # constant block index -> selection matrix stays resident, no re-DMA
                pl.BlockSpec((l_in, l_out), lambda i: (0, 0)),
            ],
            out_specs=pl.BlockSpec((bn, c_out, l_out), lambda i: (i, 0, 0)),
        ),
        compiler_params=pltpu.CompilerParams(
            dimension_semantics=("parallel",)),
    )(x2, s)

    # Free reshape (contiguous split of trailing dim) back to NCHW.
    return out_flat.reshape(n, c_out, h_out, w_out)


if __name__ == "__main__":
    key = jax.random.PRNGKey(0)
    N, C, H, W = 2, 4, 16, 16
    planes = 8                      # -> pad = planes // 4 = 2, C_out = 8
    x = jax.random.normal(key, (N, C, H, W), dtype=jnp.float32)

    out = jax.block_until_ready(lambda_layer(x, planes))

    # pure-JAX reference of the same lambda
    pad = planes // 4
    ref = jnp.pad(x[:, :, ::2, ::2], ((0, 0), (pad, pad), (0, 0), (0, 0)))
    assert out.shape == ref.shape, (out.shape, ref.shape)
    assert jnp.allclose(out, ref, atol=1e-6), float(jnp.max(jnp.abs(out - ref)))

    print("KERNEL_OK")
</pallas_src>

<mosaic_0001>
module attributes {stable_mosaic.version = 11 : i64} {
  func.func @kernel(%arg0: i32, %arg1: memref<1x4x256xf32, #tpu.memory_space<vmem>>, %arg2: memref<256x64xf32, #tpu.memory_space<vmem>>, %arg3: memref<1x8x64xf32, #tpu.memory_space<vmem>>) attributes {dimension_semantics = [#tpu.dimension_semantics<parallel>], iteration_bounds = array<i64: 2>, scalar_prefetch = 0 : i64, scratch_operands = 0 : i64, tpu.core_type = #tpu.core_type<tc>, window_params = [{transform_indices = @transform_0, window_bounds = array<i64: 1, 4, 256>}, {pipeline_mode = #tpu.pipeline_mode<synchronous>, transform_indices = @transform_1, window_bounds = array<i64: 256, 64>}, {transform_indices = @transform_2, window_bounds = array<i64: 1, 8, 64>}]} {
    %c0 = arith.constant 0 : index
    %c0_0 = arith.constant 0 : index
    %0 = vector.load %arg2[%c0, %c0_0] : memref<256x64xf32, #tpu.memory_space<vmem>>, vector<256x64xf32>
    %c0_1 = arith.constant 0 : index
    %c0_2 = arith.constant 0 : index
    %c0_3 = arith.constant 0 : index
    %1 = vector.load %arg1[%c0_1, %c0_2, %c0_3] : memref<1x4x256xf32, #tpu.memory_space<vmem>>, vector<1x4x256xf32>
    %2 = vector.shape_cast %1 : vector<1x4x256xf32> to vector<4x256xf32>
    %cst = arith.constant dense<0.000000e+00> : vector<4x64xf32>
    %3 = tpu.matmul %2, %0, %cst {dimension_numbers = #tpu.dot_dimension_numbers<[1], [0], [0], [1], [0, 0, 1, 1], [], []>} : vector<4x256xf32>, vector<256x64xf32>, vector<4x64xf32> -> vector<4x64xf32>
    %cst_4 = arith.constant 0.000000e+00 : f32
    %4 = vector.broadcast %cst_4 : f32 to vector<2x64xf32>
    %5 = tpu.concatenate %4, %3, %4 in 0 : vector<2x64xf32>, vector<4x64xf32>, vector<2x64xf32> -> vector<8x64xf32>
    %c0_5 = arith.constant 0 : index
    %c0_6 = arith.constant 0 : index
    %c0_7 = arith.constant 0 : index
    %6 = vector.load %arg3[%c0_5, %c0_6, %c0_7] : memref<1x8x64xf32, #tpu.memory_space<vmem>>, vector<1x8x64xf32>
    %7 = vector.shape_cast %6 : vector<1x8x64xf32> to vector<8x64xf32>
    %8 = vector.shape_cast %5 : vector<8x64xf32> to vector<1x8x64xf32>
    tpu.vector_store %arg3[%c0_5, %c0_6, %c0_7], %8 {strides = array<i32>} : memref<1x8x64xf32, #tpu.memory_space<vmem>>, vector<1x8x64xf32>,
    return
  }
  func.func @transform_0(%arg0: i32) -> (i32, i32, i32) {
    %c0_i32 = arith.constant 0 : i32
    %c0_i32_0 = arith.constant 0 : i32
    %c0_i32_1 = arith.constant 0 : i32
    return %arg0, %c0_i32, %c0_i32_0 : i32, i32, i32
  }
  func.func @transform_1(%arg0: i32) -> (i32, i32) {
    %c0_i32 = arith.constant 0 : i32
    %c0_i32_0 = arith.constant 0 : i32
    %c0_i32_1 = arith.constant 0 : i32
    return %c0_i32, %c0_i32_0 : i32, i32
  }
  func.func @transform_2(%arg0: i32) -> (i32, i32, i32) {
    %c0_i32 = arith.constant 0 : i32
    %c0_i32_0 = arith.constant 0 : i32
    %c0_i32_1 = arith.constant 0 : i32
    return %arg0, %c0_i32, %c0_i32_0 : i32, i32, i32
  }
}

</mosaic_0001>

<bundles_post_ra>
// kernel: lambda_layer.1
= control target key start
LH: loop header
LB: loop body
LE: loop exit
PB: predicated region body
PF: predicated region fallthrough
CT: control target
= control target key end

     0   :  { %s420_s9 = smov 0   ;;  %s540_s0 = inlined_call_operand.vmem [shape: f32[2,4,256], index: 0, kind: input, shape index: {}]   ;;  %s541_s1 = inlined_call_operand.vmem [shape: f32[256,64], index: 1, kind: input, shape index: {}]   ;;  %s542_s2 = inlined_call_operand.vmem [shape: f32[2,8,64], index: 2, kind: output, shape index: {}]  }
   0x1 LB: > { %s310_s10 = sadd.s32 4294967295, %s403_s9   ;;  %p314_p0 = scmp.ge.s32.totalorder %s403_s9, 1  ;;  %s403_s9 = sphi %s420_s9, %s12_s9  }
   0x2   : > { %p112_p1 = scmp.lt.s32.totalorder %s403_s9, 3 }
   0x4   : > { %p113_p2 = pnand %p314_p0, %p112_p1 }
   0x5   : > { %v158_v0 = vld [vmem:[%s541_s1 + $0x80] sm:$0xff] (!%p113_p2)  ;;  %v159_v1 = vld [vmem:[%s541_s1 + $0x88] sm:$0xff] (!%p113_p2)  ;;  %p133_p3 = scmp.lt.s32.totalorder (!%p113_p2), %s310_s10, 1  ;;  %v160_v5 = vld [vmem:[%s541_s1 + $0x90] sm:$0xff] (!%p113_p2)  ;;  %vm251_vm0 = vcmask (!%p113_p2), 1041408   ;;  %vm253_vm1 = vcmask (!%p113_p2), 1045504  }
   0x6   : > { %116 = sbr.rel (%p113_p2) target bundleno = 260 (0x104), region = 28  ;;  %v142_v2 = vld [vmem:[%s541_s1] sm:$0xff] (!%p113_p2)  ;;  %v356_v3 = vpack.c.bf16 (!%p113_p2), %v159_v1, %v158_v0  ;;  %v143_v4 = vld [vmem:[%s541_s1 + $0x8] sm:$0xff] (!%p113_p2)  ;;  %v161_v6 = vld [vmem:[%s541_s1 + $0x98] sm:$0xff] (!%p113_p2)  ;;  %vm255_vm2 = vcmask (!%p113_p2), 523264  }
   0x7   : > { %v358_v7 = vpack.c.bf16 (!%p113_p2), %v143_v4, %v142_v2  ;;  %v360_v8 = vpack.c.bf16 (!%p113_p2), %v161_v6, %v160_v5  ;;  %v144_v9 = vld [vmem:[%s541_s1 + $0x10] sm:$0xff] (!%p113_p2)  ;;  %v145_v10 = vld [vmem:[%s541_s1 + $0x18] sm:$0xff] (!%p113_p2)  ;;  %v162_v11 = vld [vmem:[%s541_s1 + $0xa0] sm:$0xff] (!%p113_p2) }
   0x8   : > { %357 = vmatprep.subr.bf16.mxu0 (!%p113_p2), %v356_v3  ;;  %v163_v12 = vld [vmem:[%s541_s1 + $0xa8] sm:$0xff] (!%p113_p2)  ;;  %v362_v13 = vpack.c.bf16 (!%p113_p2), %v145_v10, %v144_v9  ;;  %v146_v15 = vld [vmem:[%s541_s1 + $0x20] sm:$0xff] (!%p113_p2)  ;;  %v164_v17 = vld [vmem:[%s541_s1 + $0xb0] sm:$0xff] (!%p113_p2) }
   0x9   : > { %359 = vmatpush3.bf16.msra.mxu0 (!%p113_p2), %v358_v7  ;;  %v364_v14 = vpack.c.bf16 (!%p113_p2), %v163_v12, %v162_v11  ;;  %v147_v16 = vld [vmem:[%s541_s1 + $0x28] sm:$0xff] (!%p113_p2)  ;;  %v165_v18 = vld [vmem:[%s541_s1 + $0xb8] sm:$0xff] (!%p113_p2)  ;;  %v148_v21 = vld [vmem:[%s541_s1 + $0x30] sm:$0xff] (!%p113_p2) }
   0xa   : > { %361 = vmatprep.subr.bf16.mxu0 (!%p113_p2), %v360_v8  ;;  %v366_v19 = vpack.c.bf16 (!%p113_p2), %v147_v16, %v146_v15  ;;  %v368_v20 = vpack.c.bf16 (!%p113_p2), %v165_v18, %v164_v17  ;;  %v149_v22 = vld [vmem:[%s541_s1 + $0x38] sm:$0xff] (!%p113_p2)  ;;  %v166_v23 = vld [vmem:[%s541_s1 + $0xc0] sm:$0xff] (!%p113_p2)  ;;  %v167_v24 = vld [vmem:[%s541_s1 + $0xc8] sm:$0xff] (!%p113_p2) }
   0xb   : > { %v370_v27 = vpack.c.bf16 (!%p113_p2), %v149_v22, %v148_v21  ;;  %v372_v28 = vpack.c.bf16 (!%p113_p2), %v167_v24, %v166_v23  ;;  %v150_v29 = vld [vmem:[%s541_s1 + $0x40] sm:$0xff] (!%p113_p2)  ;;  %v151_v30 = vld [vmem:[%s541_s1 + $0x48] sm:$0xff] (!%p113_p2)  ;;  %v168_v31 = vld [vmem:[%s541_s1 + $0xd0] sm:$0xff] (!%p113_p2) }
   0xc   : > { %v169_v32 = vld [vmem:[%s541_s1 + $0xd8] sm:$0xff] (!%p113_p2)  ;;  %v374_v33 = vpack.c.bf16 (!%p113_p2), %v151_v30, %v150_v29  ;;  %v152_v35 = vld [vmem:[%s541_s1 + $0x50] sm:$0xff] (!%p113_p2)  ;;  %v170_v37 = vld [vmem:[%s541_s1 + $0xe0] sm:$0xff] (!%p113_p2) }
   0xd   : > { %s544_s10 = smov (!%p133_p3, %s310_s10), 1  ;;  %363 = vmatpush3.bf16.msra.mxu0 %v362_v13  ;;  %v376_v34 = vpack.c.bf16 %v169_v32, %v168_v31  ;;  %v153_v36 = vld [vmem:[%s541_s1 + $0x58] sm:$0xff]  ;;  %v171_v38 = vld [vmem:[%s541_s1 + $0xe8] sm:$0xff]  ;;  %v154_v41 = vld [vmem:[%s541_s1 + $0x60] sm:$0xff] }
   0xe   : > { %s320_s3 = sshll.u32 %s544_s10, 3  ;;  %365 = vmatprep.subr.bf16.mxu0 %v364_v14  ;;  %v378_v39 = vpack.c.bf16 %v153_v36, %v152_v35  ;;  %v380_v40 = vpack.c.bf16 %v171_v38, %v170_v37  ;;  %v155_v42 = vld [vmem:[%s541_s1 + $0x68] sm:$0xff]  ;;  %v172_v43 = vld [vmem:[%s541_s1 + $0xf0] sm:$0xff]  ;;  %v173_v44 = vld [vmem:[%s541_s1 + $0xf8] sm:$0xff] }
   0xf   : > { %s137_s16 = scalar_lea.vmem %s540_s0, %s320_s3  ;;  %v382_v45 = vpack.c.bf16 %v155_v42, %v154_v41  ;;  %v384_v46 = vpack.c.bf16 %v173_v44, %v172_v43  ;;  %v156_v47 = vld [vmem:[%s541_s1 + $0x70] sm:$0xff]  ;;  %v157_v48 = vld [vmem:[%s541_s1 + $0x78] sm:$0xff]  ;;  %s141_s30 = scalar_lea.vmem %s542_s2, %s320_s3 }
  0x10   : > { %v174_v25 = vld [vmem:[%s137_s16] sm:$0xff]  ;;  %v386_v49 = vpack.c.bf16 %v157_v48, %v156_v47 }
  0x11   : > { %v176_v26 = vcombine.high %v174_v25, %v174_v25  ;;  %367 = vmatpush3.bf16.msra.mxu0 %v366_v19 }
  0x12   : > { %369 = vmatprep.subr.bf16.mxu0 %v368_v20 }
  0x13   : > { %242 = vmatprep.mubr.f32.mxu0 %v176_v26 }
  0x15   : > { %371 = vmatpush3.bf16.msra.mxu0 %v370_v27 }
  0x16   : > { %373 = vmatprep.subr.bf16.mxu0 %v372_v28 }
  0x19   : > { %375 = vmatpush3.bf16.msra.mxu0 %v374_v33 }
  0x1a   : > { %377 = vmatprep.subr.bf16.mxu0 %v376_v34 }
  0x1d   : > { %379 = vmatpush3.bf16.msra.mxu0 %v378_v39 }
  0x1e   : > { %381 = vmatprep.subr.bf16.mxu0 %v380_v40 }
  0x21   : > { %383 = vmatpush3.bf16.msra.mxu0 %v382_v45 }
  0x22   : > { %385 = vmatprep.subr.bf16.mxu0 %v384_v46 }
  0x25   : > { %387 = vmatpush3.bf16.msra.mxu0 %v386_v49 }
  0x28   : > { %243 = vmatmul.mubr.f32.vlgmr.msra.gmra.mrb[0].mxu0 %v174_v25 }
  0xfb   : > { %v353_v50 = vpop.f32.mrb[0].mxu0 }
  0xfc   : > { %v354_v51 = vpop.f32.mrb[1].mxu0 }
  0xfd   : > { %v355_v52 = vadd.f32 %v354_v51, %v353_v50 }
  0xff   : > { %v249_v53 = vrot.slane %v355_v52, 6 }
 0x101   : > { %v252_v54 = vsel %vm251_vm0, 0.0, %v249_v53 }
 0x102   : > { %v254_v55 = vsel %vm253_vm1, %v252_v54, 0.0 }
 0x103   : > { %256 = vst.msk [vmem:[%s141_s30] sm:$0xff] %vm255_vm2, %v254_v55 }
 0x104 PF: > { %s12_s9 = sadd.s32 1, %s403_s9  }
 0x105   : > { %p9_p4 = scmp.ge.s32.totalorder %s12_s9, 4  }
 0x107   :  { %11 = sbr.rel (!%p9_p4) target bundleno = 1 (0x1), region = 58 }

</bundles_post_ra>
